<compile_context>
chip_gen: v7x
topology: tpu7x:2x2x1
jax: 0.10.0
libtpu: 0.0.40
codegen_flags: <defaults>
</compile_context>

<pallas_src>
import functools

import numpy as np
import jax
import jax.numpy as jnp
from jax.experimental import pallas as pl
from jax.experimental.pallas import tpu as pltpu


# ----------------------------- parameters ---------------------------------
SAMPLE_RATE = 16000
N_FFT = 128
WIN_LENGTH = 128
HOP_LENGTH = 64
N_MELS = 16
N_FREQ = N_FFT // 2 + 1          # 65 (one-sided spectrum)
N_FREQ_PAD = 128                 # lane-aligned frequency axis (packed cos|sin)
N_MELS_PAD = 128                 # lane-dense output block
MAX_TM = 2048                    # frames-rows per grid step (multiple of 16)
SUB_ROWS = 256                   # in-kernel sub-tile (rows) when TM % 256 == 0


# --------------------- deterministic parameter setup ----------------------
def _hann_window_np(n: int) -> np.ndarray:
    # torch.hann_window(n, periodic=True)
    i = np.arange(n, dtype=np.float64)
    return 0.5 * (1.0 - np.cos(2.0 * np.pi * i / n))


def _mel_fbanks_np(n_freqs: int, n_mels: int, sample_rate: int,
                   f_min: float = 0.0, f_max: float | None = None) -> np.ndarray:
    # torchaudio.functional.melscale_fbanks, mel_scale="htk", norm=None
    f_max = sample_rate / 2.0 if f_max is None else f_max

    def hz_to_mel(f):
        return 2595.0 * np.log10(1.0 + f / 700.0)

    def mel_to_hz(m):
        return 700.0 * (10.0 ** (m / 2595.0) - 1.0)

    all_freqs = np.linspace(0.0, sample_rate / 2.0, n_freqs)
    m_pts = np.linspace(hz_to_mel(f_min), hz_to_mel(f_max), n_mels + 2)
    f_pts = mel_to_hz(m_pts)                                  # (n_mels + 2,)
    f_diff = f_pts[1:] - f_pts[:-1]                           # (n_mels + 1,)
    slopes = f_pts[None, :] - all_freqs[:, None]              # (n_freqs, n_mels + 2)
    down = -slopes[:, :-2] / f_diff[:-1]
    up = slopes[:, 2:] / f_diff[1:]
    return np.maximum(0.0, np.minimum(down, up))              # (n_freqs, n_mels)


def _packed_windowed_dft_np(n_fft: int, n_freq: int) -> np.ndarray:
    """Hann-scaled one-sided DFT packed into n_fft lanes.

    Column layout: [0..n_freq-1] = win*cos(f=0..64), [n_freq..n_fft-1] =
    -win*sin(f=1..63) (Im of DC and Nyquist are identically 0 for real input).
    """
    k = np.arange(n_fft, dtype=np.float64)[:, None]
    f = np.arange(n_freq, dtype=np.float64)[None, :]
    ang = 2.0 * np.pi * k * f / n_fft
    win = _hann_window_np(n_fft)[:, None]
    cos_m = win * np.cos(ang)                                  # (n_fft, 65)
    sin_m = win * (-np.sin(ang[:, 1:n_freq - 1]))              # (n_fft, 63)
    packed = np.concatenate([cos_m, sin_m], axis=1)            # (n_fft, 128)
    assert packed.shape == (n_fft, n_fft)
    return packed


# Constants (trace-time / baked into the jaxpr).
_FB = _mel_fbanks_np(N_FREQ, N_MELS, SAMPLE_RATE)
# Guard for the 128-lane cos|sin packing: the DC and Nyquist mel rows must be
# exactly zero (true for f_min=0, f_max=sr/2) so the roll-summed "garbage"
# lanes 0 and 64 and lanes >=65 never contribute.
assert float(np.abs(_FB[0]).max()) < 1e-6, "DC mel weights must be ~0"
assert float(np.abs(_FB[N_FREQ - 1]).max()) < 1e-6, "Nyquist mel weights must be ~0"
_FB_PAD = np.zeros((N_FREQ_PAD, N_MELS_PAD), dtype=np.float32)
_FB_PAD[:N_FREQ, :N_MELS] = _FB
_DFT_PACKED = _packed_windowed_dft_np(N_FFT, N_FREQ).astype(np.float32)


# ------------------------------ Pallas kernel ------------------------------
def melspec_kernel(frames_ref, dft_ref, fb_ref, out_ref, *, sub_rows, n_sub):
    # frames_ref: (TM, 128) bf16    dft_ref: (128, 128) bf16 (win*cos | -win*sin)
    # fb_ref:     (128, 128) bf16 (mel filterbank, zero-padded rows/cols)
    # out_ref:    (TM, 128) bf16 (lane-dense; only first N_MELS lanes are real)
    dft = dft_ref[...]
    fb = fb_ref[...]

    # Sub-tile the TM rows (fully unrolled, static slices -> free ref views) so
    # the (rows, 128) f32 STFT intermediate stays small in VMEM/vregs.
    for j in range(n_sub):
        rows = pl.ds(j * sub_rows, sub_rows)
        y = jnp.dot(frames_ref[rows, :], dft,
                    preferred_element_type=jnp.float32)        # (rows, 128) f32
        p = y * y
        # power[f] = re[f]^2 + im[f]^2 lands in lanes 0..64; lanes 0/64 pick up
        # an extra term and lanes >=65 are garbage, but those mel rows are 0.
        s = p + pltpu.roll(p, N_FFT // 2, axis=1)
        m = jnp.dot(s.astype(jnp.bfloat16), fb,
                    preferred_element_type=jnp.float32)        # mel projection
        out_ref[rows, :] = m.astype(out_ref.dtype)


@jax.jit
def mel_spectrogram(feature: jnp.ndarray) -> jnp.ndarray:
    """feature: (B, L) float32 -> (B, n_frames, n_mels) float32."""
    B, L = feature.shape

    # center=True reflection padding (torchaudio Spectrogram default)
    pad = N_FFT // 2
    padded = jnp.pad(feature, ((0, 0), (pad, pad)), mode="reflect")
    Lp = L + 2 * pad
    n_frames = (Lp - N_FFT) // HOP_LENGTH + 1

    # framing: (B, n_frames, N_FFT).  HOP divides N_FFT -> contiguous half
    # blocks (no XLA gather).
    if (Lp % HOP_LENGTH == 0) and (N_FFT == 2 * HOP_LENGTH):
        halves = padded.reshape(B, Lp // HOP_LENGTH, HOP_LENGTH)
        frames = jnp.concatenate([halves[:, :-1], halves[:, 1:]], axis=-1)
    else:  # fallback for odd lengths / hop configs
        idx = (jnp.arange(n_frames)[:, None] * HOP_LENGTH
               + jnp.arange(N_FFT)[None, :])
        frames = padded[:, idx]
    frames = frames.reshape(B * n_frames, N_FFT).astype(jnp.bfloat16)

    # Row tiling: big tiles amortize the ~0.35 us/step overhead, multiple of 16
    # (bf16 sublane tile); capped so the grid keeps >=2 steps when M allows
    # (v7x megacore: 2 TCs shard the "parallel" axis).
    M = B * n_frames
    half = -(-M // 2)                                    # ceil(M / 2)
    TM = min(MAX_TM, max(16, ((half + 15) // 16) * 16))
    M_pad = ((M + TM - 1) // TM) * TM
    if M_pad != M:
        frames = jnp.pad(frames, ((0, M_pad - M), (0, 0)))
    sub = SUB_ROWS if TM % SUB_ROWS == 0 else TM

    dft = jnp.asarray(_DFT_PACKED, dtype=jnp.bfloat16)
    fb = jnp.asarray(_FB_PAD, dtype=jnp.bfloat16)

    flops = 4 * M_pad * N_FFT * N_FFT                    # two (.,128)@(128,128)
    bytes_accessed = (M_pad * N_FFT * 2                  # frames (bf16)
                      + M_pad * N_MELS_PAD * 2           # output (bf16)
                      + 2 * N_FFT * N_FFT * 2)           # constants (bf16)

    out = pl.pallas_call(
        functools.partial(melspec_kernel, sub_rows=sub, n_sub=TM // sub),
        out_shape=jax.ShapeDtypeStruct((M_pad, N_MELS_PAD), jnp.bfloat16),
        grid_spec=pltpu.PrefetchScalarGridSpec(
            num_scalar_prefetch=0,
            grid=(M_pad // TM,),
            in_specs=[
                pl.BlockSpec((TM, N_FFT), lambda i: (i, 0)),
                pl.BlockSpec((N_FFT, N_FFT), lambda i: (0, 0)),
                pl.BlockSpec((N_FREQ_PAD, N_MELS_PAD), lambda i: (0, 0)),
            ],
            out_specs=pl.BlockSpec((TM, N_MELS_PAD), lambda i: (i, 0)),
        ),
        compiler_params=pltpu.CompilerParams(
            dimension_semantics=("parallel",),
            vmem_limit_bytes=32 * 1024 * 1024,           # v5e default is 16 MiB
        ),
        cost_estimate=pl.CostEstimate(
            flops=flops, transcendentals=0, bytes_accessed=bytes_accessed),
    )(frames, dft, fb)

    # Slice real mels, back to f32, time-major (matches melspec(x).transpose(-1,-2)).
    return out[:M, :N_MELS].astype(jnp.float32).reshape(B, n_frames, N_MELS)


# ------------------------- module-level forward ----------------------------
def mel_spectrogram_forward(batch):
    """batch = (feature, label, datas_len); mirrors MelSpectrogram.forward."""
    # data_extract(batch) -> feature, label, datas_len (pass-through plumbing)
    feature, label, datas_len = batch
    melspec = mel_spectrogram(feature)                   # already time-major
    # Keep the module's own length formula: floor((len - n_fft)/hop + 3).
    new_len0 = jnp.floor(
        (datas_len[0].astype(jnp.float32) - N_FFT) / HOP_LENGTH + 3.0
    ).astype(jnp.int32)
    datas_len = [new_len0] + list(datas_len[1:])
    # data_pack(melspec, label, datas_len) -> tuple pass-through
    return melspec, label, datas_len


# --------------------------------- main ------------------------------------
if __name__ == "__main__":
    key = jax.random.PRNGKey(0)
    B, L = 2, 512
    feature = jax.random.normal(key, (B, L), dtype=jnp.float32)
    label = jnp.array([0, 1], dtype=jnp.int32)
    datas_len = [jnp.array([L, L], dtype=jnp.int32)]

    melspec, out_label, out_len = mel_spectrogram_forward((feature, label, datas_len))
    melspec = jax.block_until_ready(melspec)

    # sanity: expected (B, n_frames, n_mels) with n_frames = L // hop + 1 = 9
    assert melspec.shape == (B, L // HOP_LENGTH + 1, N_MELS), melspec.shape
    assert melspec.dtype == jnp.float32
    assert bool(jnp.all(melspec >= -1e-4))          # power-mel is non-negative
    assert int(out_len[0][0]) == L // HOP_LENGTH + 1

    print("KERNEL_OK")
</pallas_src>

<mosaic_0001>
module attributes {stable_mosaic.version = 11 : i64} {
  func.func @melspec_kernel(%arg0: i32, %arg1: memref<16x128xbf16, #tpu.memory_space<vmem>>, %arg2: memref<128x128xbf16, #tpu.memory_space<vmem>>, %arg3: memref<128x128xbf16, #tpu.memory_space<vmem>>, %arg4: memref<16x128xbf16, #tpu.memory_space<vmem>>) attributes {dimension_semantics = [#tpu.dimension_semantics<parallel>], iteration_bounds = array<i64: 2>, scalar_prefetch = 0 : i64, scratch_operands = 0 : i64, tpu.core_type = #tpu.core_type<tc>, window_params = [{transform_indices = @transform_0, window_bounds = array<i64: 16, 128>}, {pipeline_mode = #tpu.pipeline_mode<synchronous>, transform_indices = @transform_1, window_bounds = array<i64: 128, 128>}, {pipeline_mode = #tpu.pipeline_mode<synchronous>, transform_indices = @transform_2, window_bounds = array<i64: 128, 128>}, {transform_indices = @transform_3, window_bounds = array<i64: 16, 128>}]} {
    %c0 = arith.constant 0 : index
    %c0_0 = arith.constant 0 : index
    %0 = vector.load %arg2[%c0, %c0_0] : memref<128x128xbf16, #tpu.memory_space<vmem>>, vector<128x128xbf16>
    %c0_1 = arith.constant 0 : index
    %c0_2 = arith.constant 0 : index
    %1 = vector.load %arg3[%c0_1, %c0_2] : memref<128x128xbf16, #tpu.memory_space<vmem>>, vector<128x128xbf16>
    %c0_3 = arith.constant 0 : index
    %c0_4 = arith.constant 0 : index
    %2 = vector.load %arg1[%c0_3, %c0_4] : memref<16x128xbf16, #tpu.memory_space<vmem>>, vector<16x128xbf16>
    %cst = arith.constant dense<0.000000e+00> : vector<16x128xf32>
    %3 = tpu.matmul %2, %0, %cst {dimension_numbers = #tpu.dot_dimension_numbers<[1], [0], [0], [1], [0, 0, 1, 1], [], []>} : vector<16x128xbf16>, vector<128x128xbf16>, vector<16x128xf32> -> vector<16x128xf32>
    %4 = arith.mulf %3, %3 : vector<16x128xf32>
    %c64_i32 = arith.constant 64 : i32
    %5 = tpu.dynamic_rotate %4 by %c64_i32 dim 1 : vector<16x128xf32>, i32 -> vector<16x128xf32>
    %6 = arith.addf %4, %5 : vector<16x128xf32>
    %7 = arith.truncf %6 : vector<16x128xf32> to vector<16x128xbf16>
    %cst_5 = arith.constant dense<0.000000e+00> : vector<16x128xf32>
    %8 = tpu.matmul %7, %1, %cst_5 {dimension_numbers = #tpu.dot_dimension_numbers<[1], [0], [0], [1], [0, 0, 1, 1], [], []>} : vector<16x128xbf16>, vector<128x128xbf16>, vector<16x128xf32> -> vector<16x128xf32>
    %9 = arith.truncf %8 : vector<16x128xf32> to vector<16x128xbf16>
    %c0_6 = arith.constant 0 : index
    %c0_7 = arith.constant 0 : index
    %10 = vector.load %arg4[%c0_6, %c0_7] : memref<16x128xbf16, #tpu.memory_space<vmem>>, vector<16x128xbf16>
    tpu.vector_store %arg4[%c0_6, %c0_7], %9 {strides = array<i32>} : memref<16x128xbf16, #tpu.memory_space<vmem>>, vector<16x128xbf16>,
    return
  }
  func.func @transform_0(%arg0: i32) -> (i32, i32) {
    %c0_i32 = arith.constant 0 : i32
    %c0_i32_0 = arith.constant 0 : i32
    return %arg0, %c0_i32 : i32, i32
  }
  func.func @transform_1(%arg0: i32) -> (i32, i32) {
    %c0_i32 = arith.constant 0 : i32
    %c0_i32_0 = arith.constant 0 : i32
    %c0_i32_1 = arith.constant 0 : i32
    return %c0_i32, %c0_i32_0 : i32, i32
  }
  func.func @transform_2(%arg0: i32) -> (i32, i32) {
    %c0_i32 = arith.constant 0 : i32
    %c0_i32_0 = arith.constant 0 : i32
    %c0_i32_1 = arith.constant 0 : i32
    return %c0_i32, %c0_i32_0 : i32, i32
  }
  func.func @transform_3(%arg0: i32) -> (i32, i32) {
    %c0_i32 = arith.constant 0 : i32
    %c0_i32_0 = arith.constant 0 : i32
    return %arg0, %c0_i32 : i32, i32
  }
}

</mosaic_0001>

<bundles_post_ra>
// kernel: mel_spectrogram.1
= control target key start
LH: loop header
LB: loop body
LE: loop exit
PB: predicated region body
PF: predicated region fallthrough
CT: control target
= control target key end

     0   :  { %s622_s12 = smov 0   ;;  %s694_s0 = inlined_call_operand.vmem [shape: bf16[32,128], index: 0, kind: input, shape index: {}]   ;;  %s695_s1 = inlined_call_operand.vmem [shape: bf16[128,128], index: 1, kind: input, shape index: {}]   ;;  %s696_s2 = inlined_call_operand.vmem [shape: bf16[128,128], index: 2, kind: input, shape index: {}]   ;;  %s697_s3 = inlined_call_operand.vmem [shape: bf16[32,128], index: 3, kind: output, shape index: {}]  }
   0x1 LB: > { %s468_s13 = sadd.s32 4294967295, %s597_s12   ;;  %p472_p0 = scmp.ge.s32.totalorder %s597_s12, 1  ;;  %s597_s12 = sphi %s622_s12, %s13_s12  }
   0x2   : > { %p138_p1 = scmp.lt.s32.totalorder %s597_s12, 3 }
   0x4   : > { %p139_p2 = pnand %p472_p0, %p138_p1 }
   0x5   : > { %v574_v0 = vld [vmem:[%s695_s1] sm:$0xff] (!%p139_p2)   ;;  %v599_v1 = vmov (!%p139_p2), 0.0   ;;  %v575_v2 = vld [vmem:[%s695_s1 + $0x8] sm:$0xff] (!%p139_p2)   ;;  %vm600_vm0 = vmmov (!%p139_p2), 0   ;;  %s473_s18 = sshll.u32 (!%p139_p2), %s468_s13, 1  ;;  %v576_v3 = vld [vmem:[%s695_s1 + $0x10] sm:$0xff] (!%p139_p2)  }
   0x6   : > { %142 = sbr.rel (%p139_p2) target bundleno = 592 (0x250), region = 32  ;;  %523 = vmatprep.subr.bf16.mxu0 (!%p139_p2), %v599_v1  ;;  %543 = vmatprep.subr.bf16.mxu1 (!%p139_p2), %v599_v1  ;;  %p163_p3 = scmp.lt.s32.totalorder (!%p139_p2), %s473_s18, 3  ;;  %v577_v4 = vld [vmem:[%s695_s1 + $0x18] sm:$0xff] (!%p139_p2)   ;;  %v578_v5 = vld [vmem:[%s695_s1 + $0x20] sm:$0xff] (!%p139_p2)   ;;  %v579_v6 = vld [vmem:[%s695_s1 + $0x28] sm:$0xff] (!%p139_p2)  }
   0x7   : > { %524 = vmatpush3.bf16.msra.mxu0 (!%p139_p2), %v574_v0  ;;  %539 = vmatprep.mubr.msk.bf16.mxu0 (!%p139_p2), %vm600_vm0, %v599_v1  ;;  %v580_v7 = vld [vmem:[%s695_s1 + $0x30] sm:$0xff] (!%p139_p2)   ;;  %v581_v8 = vld [vmem:[%s695_s1 + $0x38] sm:$0xff] (!%p139_p2)   ;;  %v583_v10 = vld [vmem:[%s696_s2] sm:$0xff] (!%p139_p2)   ;;  %s601_s27 = smov (!%p139_p2), 64  }
   0x8   : > { %525 = vmatprep.subr.bf16.mxu0 (!%p139_p2), %v599_v1  ;;  %559 = vmatprep.mubr.msk.bf16.mxu1 (!%p139_p2), %vm600_vm0, %v599_v1  ;;  %v584_v11 = vld [vmem:[%s696_s2 + $0x8] sm:$0xff] (!%p139_p2)   ;;  %v585_v12 = vld [vmem:[%s696_s2 + $0x10] sm:$0xff] (!%p139_p2)   ;;  %v586_v13 = vld [vmem:[%s696_s2 + $0x18] sm:$0xff] (!%p139_p2)  }
   0x9   : > { %544 = vmatpush3.bf16.msra.mxu1 (!%p139_p2), %v583_v10  ;;  %v587_v14 = vld [vmem:[%s696_s2 + $0x20] sm:$0xff] (!%p139_p2)   ;;  %v588_v15 = vld [vmem:[%s696_s2 + $0x28] sm:$0xff] (!%p139_p2)   ;;  %v589_v16 = vld [vmem:[%s696_s2 + $0x30] sm:$0xff] (!%p139_p2)  }
   0xa   : > { %545 = vmatprep.subr.bf16.mxu1 (!%p139_p2), %v599_v1  ;;  %v590_v17 = vld [vmem:[%s696_s2 + $0x38] sm:$0xff] (!%p139_p2)  }
   0xb   : > { %526 = vmatpush3.bf16.msra.mxu0 (!%p139_p2), %v575_v2 }
   0xc   : > { %527 = vmatprep.subr.bf16.mxu0 (!%p139_p2), %v599_v1 }
   0xd   : > { %s699_s18 = smov (!%p163_p3, %s473_s18), 3  ;;  %546 = vmatpush3.bf16.msra.mxu1 %v584_v11 }
   0xe   : > { %s474_s21 = sshll.u32 %s699_s18, 2  ;;  %547 = vmatprep.subr.bf16.mxu1 %v599_v1 }
   0xf   : > { %s166_s24 = scalar_lea.vmem %s694_s0, %s474_s21  ;;  %528 = vmatpush3.bf16.msra.mxu0 %v576_v3  ;;  %s172_s30 = scalar_lea.vmem %s697_s3, %s474_s21 }
  0x10   : > { %529 = vmatprep.subr.bf16.mxu0 %v599_v1  ;;  %v582_v9 = vld [vmem:[%s166_s24] sm:$0xff]  }
  0x11   : > { %548 = vmatpush3.bf16.msra.mxu1 %v585_v12 }
  0x12   : > { %549 = vmatprep.subr.bf16.mxu1 %v599_v1 }
  0x13   : > { %530 = vmatpush3.bf16.msra.mxu0 %v577_v4 }
  0x14   : > { %531 = vmatprep.subr.bf16.mxu0 %v599_v1 }
  0x15   : > { %550 = vmatpush3.bf16.msra.mxu1 %v586_v13 }
  0x16   : > { %551 = vmatprep.subr.bf16.mxu1 %v599_v1 }
  0x17   : > { %532 = vmatpush3.bf16.msra.mxu0 %v578_v5 }
  0x18   : > { %533 = vmatprep.subr.bf16.mxu0 %v599_v1 }
  0x19   : > { %552 = vmatpush3.bf16.msra.mxu1 %v587_v14 }
  0x1a   : > { %553 = vmatprep.subr.bf16.mxu1 %v599_v1 }
  0x1b   : > { %534 = vmatpush3.bf16.msra.mxu0 %v579_v6 }
  0x1c   : > { %535 = vmatprep.subr.bf16.mxu0 %v599_v1 }
  0x1d   : > { %554 = vmatpush3.bf16.msra.mxu1 %v588_v15 }
  0x1e   : > { %555 = vmatprep.subr.bf16.mxu1 %v599_v1 }
  0x1f   : > { %536 = vmatpush3.bf16.msra.mxu0 %v580_v7 }
  0x20   : > { %537 = vmatprep.subr.bf16.mxu0 %v599_v1 }
  0x21   : > { %556 = vmatpush3.bf16.msra.mxu1 %v589_v16 }
  0x22   : > { %557 = vmatprep.subr.bf16.mxu1 %v599_v1 }
  0x23   : > { %538 = vmatpush3.bf16.msra.mxu0 %v581_v8 }
  0x25   : > { %558 = vmatpush3.bf16.msra.mxu1 %v590_v17 }
  0x26   : > { %540 = vmatmul.mubr.bf16.vlgmr.msra.gmra.mrb[0].mxu0 %v582_v9 }
  0xf9   : > { %v297_v18 = vpop.f32.mrb[0].mxu0 }
  0xfa   : > { %v304_v19 = vmul.f32 %v297_v18, %v297_v18  ;;  %v541_v20 = vpop.f32.mrb[1].mxu0 }
  0xfb   : > { %v300_v21 = vpop.f32.mrb[2].mxu0 }
  0xfc   : > { %306 = vrot.lane.b32.xlu0 %v304_v19, %s601_s27  ;;  %v542_v22 = vpop.f32.mrb[3].mxu0  ;;  %v305_v23 = vmul.f32 %v300_v21, %v300_v21 }
 0x100   : > { %308 = vrot.lane.b32.xlu0 %v305_v23, %s601_s27 }
 0x16e   : > { %v307_v24 = vpop.permute.xlu0 %306 }
 0x16f   : > { %v310_v26 = vadd.f32 %v307_v24, %v304_v19 }
 0x172   : > { %v309_v25 = vpop.permute.xlu0 %308 }
 0x173   : > { %v311_v27 = vadd.f32 %v309_v25, %v305_v23 }
 0x175   : > { %v312_v28 = vpack.c.bf16 %v311_v27, %v310_v26 }
 0x177   : > { %560 = vmatmul.mubr.bf16.vlgmr.msra.gmra.mrb[0].mxu1 %v312_v28 }
 0x24a   : > { %v395_v29 = vpop.f32.mrb[0].mxu1 }
 0x24b   : > { %v561_v30 = vpop.f32.mrb[1].mxu1 }
 0x24c   : > { %v398_v31 = vpop.f32.mrb[2].mxu1 }
 0x24d   : > { %v503_v32 = vpack.c.bf16 %v398_v31, %v395_v29  ;;  %v562_v33 = vpop.f32.mrb[3].mxu1 }
 0x24f   : > { %504 = vst [vmem:[%s172_s30] sm:$0xff] %v503_v32  }
 0x250 PF: > { %s13_s12 = sadd.s32 1, %s597_s12  }
 0x251   : > { %p10_p4 = scmp.ge.s32.totalorder %s13_s12, 4  }
 0x253   :  { %12 = sbr.rel (!%p10_p4) target bundleno = 1 (0x1), region = 62 }

</bundles_post_ra>
